<compile_context>
chip_gen: v7x
topology: tpu7x:2x2x1
jax: 0.10.0
libtpu: 0.0.40
codegen_flags: <defaults>
</compile_context>

<pallas_src>
import jax
import jax.numpy as jnp
from jax.experimental import pallas as pl
from jax.experimental.pallas import tpu as pltpu


def nlinear_kernel(x_ref, w_ref, b_ref, o_ref):
    # x_ref: (nb, T, ch_tile)        time on sublanes, channels on lanes
    # w_ref: (pred_len, T)           folded weight (re-centering absorbed)
    # b_ref: (pred_len, 1)           bias, f32
    # o_ref: (nb, pred_len, ch_tile) lane-dense output slab
    w = w_ref[...]
    b = b_ref[...]
    for n in range(x_ref.shape[0]):                      # nb is small & static
        y = jnp.dot(w, x_ref[n], preferred_element_type=jnp.float32)
        o_ref[n] = (y + b).astype(o_ref.dtype)


def _round_down_128(v):
    return max(128, (int(v) // 128) * 128)


def _choose_tiling(B, T, pred_len, Ch, in_itemsize, out_itemsize,
                   vmem_budget_bytes, step_bytes_target):
    # Per-channel-column cost of the double-buffered streaming working set,
    # including the f32 matmul/epilogue intermediate.
    per_col_vmem = (2 * T * in_itemsize
                    + 2 * pred_len * out_itemsize
                    + 2 * pred_len * 4)
    per_col_hbm = T * in_itemsize + pred_len * out_itemsize

    if Ch <= 128:
        ch_tile = Ch                                     # full-extent lane block
    else:
        budget_tile = _round_down_128(vmem_budget_bytes // per_col_vmem)
        target_tile = _round_down_128(step_bytes_target // per_col_hbm)
        ch_tile = min(budget_tile, target_tile)
        if Ch <= ch_tile:
            ch_tile = Ch                                 # single full channel block

    n_ch = pl.cdiv(Ch, ch_tile)

    # v7x has 2 TensorCores: prefer >= 4 grid steps and an even step count.
    if Ch > 128:
        for _ in range(8):
            steps = B * n_ch
            if (steps >= 4 and steps % 2 == 0) or ch_tile <= 128:
                break
            ch_tile = _round_down_128(ch_tile // 2)
            n_ch = pl.cdiv(Ch, ch_tile)

    # Small per-step traffic: batch several B-rows per grid step (wide,
    # contiguous DMAs; amortized per-step overhead). Keep >=2 steps for v7x.
    nb = 1
    per_step = ch_tile * per_col_hbm
    if n_ch == 1 and B > 1 and per_step < step_bytes_target:
        nb = min(B, 32, max(1, step_bytes_target // max(per_step, 1)))
        nb = min(nb, max(1, pl.cdiv(B, 2)))
    return nb, ch_tile, n_ch


def nlinear_forward(x_raw, weight, bias, pred_len, *, ch_tile=None, nb=None,
                    vmem_budget_bytes=10 << 20, step_bytes_target=3 << 20):
    """x_raw: (B, T, C, H, W).  weight: (pred_len, T).  bias: (pred_len,)."""
    B, T, C, H, W = x_raw.shape
    Ch = C * H * W
    assert weight.shape == (pred_len, T)
    in_itemsize = jnp.dtype(x_raw.dtype).itemsize
    out_itemsize = in_itemsize

    # Pure reshapes (no data movement).
    x3d = x_raw.reshape(B, T, Ch)
    # Bias stays f32: it is added to the f32 MXU result before the store cast.
    b2d = bias.reshape(pred_len, 1).astype(jnp.float32)
    # Fold re-centering into the weight:
    #   W @ (x - s) + b + s == W' @ x + b   with   W'[:, -1] += 1 - rowsum(W)
    w_folded = weight.at[:, -1].add(1.0 - jnp.sum(weight, axis=1))

    auto_nb, auto_tile, _ = _choose_tiling(
        B, T, pred_len, Ch, in_itemsize, out_itemsize,
        vmem_budget_bytes, step_bytes_target)
    if ch_tile is None:
        ch_tile = auto_tile
    if nb is None:
        nb = auto_nb
    n_ch = pl.cdiv(Ch, ch_tile)
    n_b = pl.cdiv(B, nb)

    # Explicit VMEM limit: double-buffered x/out slabs, f32 intermediate,
    # weight/bias (lane padded). Floor 32 MiB (v5e default is only 16 MiB),
    # cap 48 MiB so we never crowd v7x's 64 MiB/TC.
    w_itemsize = jnp.dtype(w_folded.dtype).itemsize
    blk_bytes = 2 * nb * T * ch_tile * in_itemsize          # x blocks (2-buf)
    blk_bytes += 2 * nb * pred_len * ch_tile * out_itemsize  # out blocks (2-buf)
    blk_bytes += 2 * pred_len * ch_tile * 4                  # f32 dot/epilogue temp
    blk_bytes += 2 * pred_len * max(T, 128) * w_itemsize     # weight (lane padded)
    blk_bytes += 4 * pred_len * 128 * 4                      # bias (lane padded)
    vmem_limit = int(max(min(blk_bytes + (4 << 20), 48 << 20),
                         32 << 20, blk_bytes + (1 << 20)))

    # Pure HBM streaming: give XLA a cost hint for scheduling/overlap.
    cost = pl.CostEstimate(
        flops=2 * B * pred_len * T * Ch,
        transcendentals=0,
        bytes_accessed=(B * Ch * (T * in_itemsize + pred_len * out_itemsize)
                        + pred_len * T * w_itemsize + pred_len * 4),
    )

    out3d = pl.pallas_call(
        nlinear_kernel,
        out_shape=jax.ShapeDtypeStruct((B, pred_len, Ch), x_raw.dtype),
        grid_spec=pltpu.PrefetchScalarGridSpec(
            num_scalar_prefetch=0,
            grid=(n_b, n_ch),
            in_specs=[
                pl.BlockSpec((nb, T, ch_tile), lambda i, j: (i, 0, j)),
                pl.BlockSpec((pred_len, T), lambda i, j: (0, 0)),
                pl.BlockSpec((pred_len, 1), lambda i, j: (0, 0)),
            ],
            out_specs=pl.BlockSpec((nb, pred_len, ch_tile),
                                   lambda i, j: (i, 0, j)),
        ),
        compiler_params=pltpu.CompilerParams(
            dimension_semantics=("parallel", "parallel"),
            vmem_limit_bytes=vmem_limit),
        cost_estimate=cost,
    )(x3d, w_folded, b2d)

    # (B, pred_len, Ch) -> (B, pred_len, C, H, W): pure reshape, no transpose.
    return out3d.reshape(B, pred_len, C, H, W)


if __name__ == "__main__":
    # Small shapes consistent with the module: shape=(T, C, H, W), N_T=pred_len.
    B, T, C, H, W = 2, 8, 4, 4, 4
    N_T = 32
    Ch = C * H * W

    key = jax.random.PRNGKey(0)
    k_x, k_w, k_b = jax.random.split(key, 3)

    x_raw = jax.random.normal(k_x, (B, T, C, H, W), dtype=jnp.float32)

    # Deterministic nn.Linear(seq_len, pred_len)-style init: U(-1/sqrt(T), 1/sqrt(T))
    bound = 1.0 / (T ** 0.5)
    weight = jax.random.uniform(k_w, (N_T, T), dtype=jnp.float32,
                                minval=-bound, maxval=bound)
    bias = jax.random.uniform(k_b, (N_T,), dtype=jnp.float32,
                              minval=-bound, maxval=bound)

    out = nlinear_forward(x_raw, weight, bias, N_T)
    out = jax.block_until_ready(out)

    # Pure-JAX reference (same math as the PyTorch forward, centred formulation).
    x = x_raw.reshape(B, T, Ch)
    seq_last = x[:, -1:, :]
    xc = x - seq_last
    ref = jnp.einsum("btc,pt->bpc", xc, weight) + bias[None, :, None]
    ref = (ref + seq_last).reshape(B, N_T, C, H, W)

    assert out.shape == (B, N_T, C, H, W)
    assert jnp.allclose(out, ref, atol=1e-4, rtol=1e-4)
    print("KERNEL_OK")
</pallas_src>

<mosaic_0001>
module attributes {stable_mosaic.version = 11 : i64} {
  func.func @nlinear_kernel(%arg0: i32, %arg1: i32, %arg2: memref<1x8x64xf32, #tpu.memory_space<vmem>>, %arg3: memref<32x8xf32, #tpu.memory_space<vmem>>, %arg4: memref<32x1xf32, #tpu.memory_space<vmem>>, %arg5: memref<1x32x64xf32, #tpu.memory_space<vmem>>) attributes {dimension_semantics = [#tpu.dimension_semantics<parallel>, #tpu.dimension_semantics<parallel>], iteration_bounds = array<i64: 2, 1>, scalar_prefetch = 0 : i64, scratch_operands = 0 : i64, tpu.core_type = #tpu.core_type<tc>, window_params = [{transform_indices = @transform_0, window_bounds = array<i64: 1, 8, 64>}, {pipeline_mode = #tpu.pipeline_mode<synchronous>, transform_indices = @transform_1, window_bounds = array<i64: 32, 8>}, {pipeline_mode = #tpu.pipeline_mode<synchronous>, transform_indices = @transform_2, window_bounds = array<i64: 32, 1>}, {transform_indices = @transform_3, window_bounds = array<i64: 1, 32, 64>}]} {
    %c0 = arith.constant 0 : index
    %c0_0 = arith.constant 0 : index
    %0 = vector.load %arg3[%c0, %c0_0] : memref<32x8xf32, #tpu.memory_space<vmem>>, vector<32x8xf32>
    %c0_1 = arith.constant 0 : index
    %c0_2 = arith.constant 0 : index
    %1 = vector.load %arg4[%c0_1, %c0_2] : memref<32x1xf32, #tpu.memory_space<vmem>>, vector<32x1xf32>
    %c0_3 = arith.constant 0 : index
    %c0_4 = arith.constant 0 : index
    %c0_5 = arith.constant 0 : index
    %2 = vector.load %arg2[%c0_3, %c0_4, %c0_5] : memref<1x8x64xf32, #tpu.memory_space<vmem>>, vector<1x8x64xf32>
    %3 = vector.shape_cast %2 : vector<1x8x64xf32> to vector<8x64xf32>
    %cst = arith.constant dense<0.000000e+00> : vector<32x64xf32>
    %4 = tpu.matmul %0, %3, %cst {dimension_numbers = #tpu.dot_dimension_numbers<[1], [0], [0], [1], [0, 0, 1, 1], [], []>} : vector<32x8xf32>, vector<8x64xf32>, vector<32x64xf32> -> vector<32x64xf32>
    %5 = vector.broadcast %1 : vector<32x1xf32> to vector<32x64xf32>
    %6 = arith.addf %4, %5 : vector<32x64xf32>
    %c0_6 = arith.constant 0 : index
    %c0_7 = arith.constant 0 : index
    %c0_8 = arith.constant 0 : index
    %7 = vector.load %arg5[%c0_6, %c0_7, %c0_8] : memref<1x32x64xf32, #tpu.memory_space<vmem>>, vector<1x32x64xf32>
    %8 = vector.shape_cast %7 : vector<1x32x64xf32> to vector<32x64xf32>
    %9 = vector.shape_cast %6 : vector<32x64xf32> to vector<1x32x64xf32>
    tpu.vector_store %arg5[%c0_6, %c0_7, %c0_8], %9 {strides = array<i32>} : memref<1x32x64xf32, #tpu.memory_space<vmem>>, vector<1x32x64xf32>,
    return
  }
  func.func @transform_0(%arg0: i32, %arg1: i32) -> (i32, i32, i32) {
    %c0_i32 = arith.constant 0 : i32
    %c0_i32_0 = arith.constant 0 : i32
    return %arg0, %c0_i32, %arg1 : i32, i32, i32
  }
  func.func @transform_1(%arg0: i32, %arg1: i32) -> (i32, i32) {
    %c0_i32 = arith.constant 0 : i32
    %c0_i32_0 = arith.constant 0 : i32
    %c0_i32_1 = arith.constant 0 : i32
    return %c0_i32, %c0_i32_0 : i32, i32
  }
  func.func @transform_2(%arg0: i32, %arg1: i32) -> (i32, i32) {
    %c0_i32 = arith.constant 0 : i32
    %c0_i32_0 = arith.constant 0 : i32
    %c0_i32_1 = arith.constant 0 : i32
    return %c0_i32, %c0_i32_0 : i32, i32
  }
  func.func @transform_3(%arg0: i32, %arg1: i32) -> (i32, i32, i32) {
    %c0_i32 = arith.constant 0 : i32
    %c0_i32_0 = arith.constant 0 : i32
    return %arg0, %c0_i32, %arg1 : i32, i32, i32
  }
}

</mosaic_0001>

<bundles_post_ra>
// kernel: tpu_custom_call.1
= control target key start
LH: loop header
LB: loop body
LE: loop exit
PB: predicated region body
PF: predicated region fallthrough
CT: control target
= control target key end

     0   :  { %8 = vsyncpa [#allocation3], 0  ;;  %s752_s0 = inlined_call_operand.vmem [shape: f32[2,8,64], index: 0, kind: input, shape index: {}]   ;;  %s753_s1 = inlined_call_operand.vmem [shape: f32[32,8], index: 1, kind: input, shape index: {}]   ;;  %s754_s2 = inlined_call_operand.vmem [shape: f32[32,1], index: 2, kind: input, shape index: {}]   ;;  %s755_s3 = inlined_call_operand.hbm [shape: f32[2,32,64], index: 3, kind: output, shape index: {}]  }
   0x1   :  { %10 = vsyncpa [#allocation3 + $0x1], 0  ;;  %s609_s12 = smov 0   ;;  %s611_s13 = smov 0  }
   0x2   :  { %s613_s14 = smov 0   ;;  %s615_s15 = smov 0  }
   0x3   :  { %s617_s16 = smov 0   ;;  %s619_s17 = smov 0  }
   0x4 LB: > { %s413_s18 = sadd.s32 4294967295, %s583_s17   ;;  %s414_s19 = sadd.s32 4294967294, %s583_s17   ;;  %s583_s17 = sphi %s619_s17, %s16_s17   ;;  %s579_s16 = sphi %s617_s16, %s762_s16   ;;  %s575_s15 = sphi %s615_s15, %s761_s15   ;;  %s571_s14 = sphi %s613_s14, %s760_s14   ;;  %s567_s13 = sphi %s611_s13, %s759_s13   ;;  %s563_s12 = sphi %s609_s12, %s758_s12  }
   0x5   : > { %s28_s20 = sadd.s32 1, %s579_s16  ;;  %s107_s21 = sadd.s32 1, %s571_s14 }
   0x6   : > { %p30_p0 = scmp.ge.s32.totalorder %s28_s20, 2  ;;  %p117_p1 = scmp.ne.s32.totalorder %s571_s14, %s567_s13 }
   0x7   : > { %p118_p2 = scmp.eq.s32.totalorder %s413_s18, 1  ;;  %p123_p3 = scmp.ne.s32.totalorder %s567_s13, %s563_s12 }
   0x8   : > { %s764_s20 = smov (%p30_p0, %s28_s20), 0  ;;  %p124_p5 = scmp.eq.s32.totalorder %s414_s19, 1 }
   0x9   : > { %p649_p4 = por %p118_p2, %p117_p1  ;;  %s102_s23 = ssub.s32 %s579_s16, %s764_s20 }
   0xa   : > { %p417_p6 = scmp.ge.s32.totalorder %s583_s17, 1  ;;  %p105_p7 = scmp.eq.s32.totalorder %s102_s23, 0 }
   0xb   : > { %p656_p8 = por %p124_p5, %p123_p3  ;;  %p158_p9 = scmp.lt.s32.totalorder %s583_s17, 3 }
   0xc   : > { %s662_s25 = scalar_select %p105_p7, %s571_s14, %s107_s21  }
   0xd   : > { %p159_p10 = pnand %p417_p6, %p158_p9 }
   0xe   : > { %p184_p11 = scmp.lt.s32.totalorder (!%p159_p10), %s575_s15, 1  ;;  %v191_v0 = vld [vmem:[%s753_s1] sm:$0xff] (!%p159_p10)  ;;  %vm220_vm0 = vcmask (!%p159_p10), 64512   ;;  %v193_v1 = vld [vmem:[%s753_s1 + $0x10] sm:$0xff] (!%p159_p10)  ;;  %v585_v4 = vmov (!%p159_p10), 0   ;;  %v192_v6 = vld [vmem:[%s753_s1 + $0x8] sm:$0xff] (!%p159_p10) }
   0xf   : > { %162 = sbr.rel (%p159_p10) target bundleno = 259 (0x103), region = 32  ;;  %437 = vmatprep.mubr.msk.f32.mxu0 (!%p159_p10), %vm220_vm0, %v191_v0  ;;  %440 = vmatprep.mubr.msk.f32.mxu1 (!%p159_p10), %vm220_vm0, %v193_v1  ;;  %v197_v2 = vld [vmem:[%s754_s2 + $0x10] sm:$0xff] (!%p159_p10)  ;;  %v195_v3 = vld [vmem:[%s754_s2] sm:$0xff] (!%p159_p10)  ;;  %v194_v7 = vld [vmem:[%s753_s1 + $0x18] sm:$0xff] (!%p159_p10)  ;;  %s181_s30 = sand.u32 (!%p159_p10), 1, %s567_s13   ;;  %vm318_vm1 = vcmask (!%p159_p10), 523264  }
  0x10   : > { %504 = vset.pattern.permute.xlu1 (!%p159_p10), %v585_v4  ;;  %503 = vset.pattern.permute.xlu0 (!%p159_p10), %v585_v4  ;;  %v198_v8 = vld [vmem:[%s754_s2 + $0x18] sm:$0xff] (!%p159_p10)  ;;  %v196_v9 = vld [vmem:[%s754_s2 + $0x8] sm:$0xff] (!%p159_p10)  ;;  %s418_s4 = sshll.u32 (!%p159_p10), %s181_s30, 5  ;;  %s586_s18 = smov (!%p159_p10), [#allocation2]  }
  0x11   : > { %212 = vperm.xlu1 (!%p159_p10), %504, %v197_v2   ;;  %202 = vperm.xlu0 (!%p159_p10), %503, %v195_v3   ;;  %s183_s5 = scalar_lea.vmem (!%p159_p10), [#allocation2], %s418_s4  ;;  %s509_s19 = sshll.u32 (!%p159_p10), %s586_s18, 4  ;;  %s510_s19 = int_to_ptr.vmem [resolvable:$false] %s509_s19 }
  0x12   : > { %s338_s6 = sshll.u32 (!%p159_p10), %s183_s5, 4  ;;  %s511_s21 = scalar_lea.vmem (!%p159_p10), %s510_s19, 1024  ;;  %s699_s6 = int_to_ptr.vmem [resolvable:$true] %s338_s6 }
  0x13   : > { %p512_p1 = scmp.lt.s32.totalorder (!%p159_p10), %s699_s6, %s510_s19 }
  0x15   : > { %217 = vperm.xlu1 (!%p159_p10), %504, %v198_v8   ;;  %207 = vperm.xlu0 (!%p159_p10), %503, %v196_v9  }
  0x16   : > { %s185_s7 = scalar_select %p184_p11, %s575_s15, 1 }
  0x18   : > { %s419_s8 = sshll.u32 %s185_s7, 3  ;;  %s429_s7 = sshll.u32 %s575_s15, 9 }
  0x19   : > { %s190_s11 = scalar_lea.vmem %s752_s0, %s419_s8  ;;  %s704_s10 = scalar_lea.hbm %s755_s3, %s429_s7 }
  0x1a   : > { %v199_v5 = vld [vmem:[%s190_s11] sm:$0xff]  ;;  %s706_s15 = scalar_lea.sflag [#allocation3], %s181_s30  ;;  %s505_s11 = scalar_lea.vmem %s699_s6, 512 }
  0x1b   : > { %435 = vmatprep.subr.mxu0 %v199_v5  ;;  %443 = vmatprep.subr.mxu1 %v199_v5  ;;  %p506_p12 = scmp.ne.s32.totalorder %s699_s6, %s505_s11  ;;  %p513_p2 = scmp.lt.s32.totalorder %s511_s21, %s505_s11 }
  0x1c   : > { %436 = vmatpush3.msra.mxu0 %v199_v5  ;;  %444 = vmatpush3.msra.mxu1 %v199_v5 }
  0x1d   : > { %438 = vmatmul.mubr.msk.f32.vlgmr.msra.gmra.mrb[0].mxu0 %vm220_vm0, %v192_v6  ;;  %441 = vmatmul.mubr.msk.f32.vlgmr.msra.gmra.mrb[0].mxu1 %vm220_vm0, %v194_v7  ;;  %p507_p13 = pnand %p506_p12, %p649_p4  ;;  %p514_p3 = por %p513_p2, %p512_p1 }
  0x1f   : > { %p508_p0 = pneg %p507_p13 }
  0x21   : > { %p515_p5 = pnand %p514_p3, %p508_p0 }
  0x90   : > { %v213_v10 = vpop.permute.xlu1 %212  ;;  %v203_v11 = vpop.permute.xlu0 %202 }
  0x94   : > { %v218_v12 = vpop.permute.xlu1 %217  ;;  %v208_v13 = vpop.permute.xlu0 %207 }
  0xf0   : > { %v439_v14 = vpop.f32.mrb[0].mxu0  ;;  %v442_v15 = vpop.f32.mrb[0].mxu1 }
  0xf1   : > { %v305_v16 = vadd.f32 %v439_v14, %v208_v13  ;;  %v315_v17 = vadd.f32 %v442_v15, %v218_v12  ;;  %v299_v18 = vpop.f32.mrb[1].mxu0  ;;  %v309_v19 = vpop.f32.mrb[1].mxu1 }
  0xf2   : > { %v300_v20 = vadd.f32 %v299_v18, %v203_v11  ;;  %v310_v21 = vadd.f32 %v309_v19, %v213_v10 }
  0xf3   : > { %320 = vst.msk [vmem:[%s183_s5 + $0x8] sm:$0xff] %vm318_vm1, %v305_v16  ;;  %322 = vst.msk [vmem:[%s183_s5 + $0x18] sm:$0xff] %vm318_vm1, %v315_v17 }
  0xf4   : > { %319 = vst.msk [vmem:[%s183_s5] sm:$0xff] %vm318_vm1, %v300_v20  ;;  %321 = vst.msk [vmem:[%s183_s5 + $0x10] sm:$0xff] %vm318_vm1, %v310_v21 }
  0xf5   : > { %518 = shalt.err (!%p515_p5)
}
  0xf6   : > { %s519_s23 = scalar_lea.hbm %s704_s10, 512  ;;  %s523_s28 = scalar_lea.hbm %s755_s3, 1024 }
  0xf7   : > { %p520_p6 = scmp.ne.s32.totalorder %s704_s10, %s519_s23  ;;  %p524_p10 = scmp.lt.u32.totalorder %s704_s10, %s755_s3 }
  0xf8   : > { %p525_p11 = scmp.lt.u32.totalorder %s523_s28, %s519_s23  ;;  %p527_p13 = scmp.lt.u32.totalorder %s519_s23, %s704_s10 }
  0xf9   : > { %p521_p7 = pnand %p520_p6, %p649_p4 }
  0xfa   : > { %p526_p12 = por %p525_p11, %p524_p10 }
  0xfb   : > { %p522_p9 = pneg %p521_p7 }
  0xfc   : > { %p528_p0 = por %p527_p13, %p526_p12 }
  0xfe   : > { %p529_p1 = pnand %p528_p0, %p522_p9 }
 0x100   : > { %532 = shalt.err (!%p529_p1)
}
 0x101   : > { %s587_s4 = smov 128   ;;  %s588_s5 = smov 8  }
 0x102   : > { %445 = dma.vmem_to_hbm [thread:$0]  (%p649_p4), %s699_s6, 512, %s704_s10, %s706_s15, %s587_s4, %s587_s4, %s588_s5  }
 0x103 PF: > { %p451_p2 = scmp.ge.s32.totalorder %s583_s17, 2  ;;  %s353_s7 = sand.u32 1, %s563_s12  }
 0x104   : > { %s354_s8 = scalar_lea.sflag [#allocation3], %s353_s7 }
 0x105   : > { %p448_p3 = pnand %p451_p2, %p656_p8 }
 0x107   : > { %558 = dma.done.wait (!%p448_p3), %s354_s8, 512  }
 0x108   : > { %560 = vsyncadd (!%p448_p3), %s354_s8, 4294966784  ;;  %s16_s17 = sadd.s32 1, %s583_s17   ;;  %s758_s12 = smov %s567_s13 }
 0x109   : > { %p13_p5 = scmp.ge.s32.totalorder %s16_s17, 4   ;;  %s759_s13 = smov %s571_s14 }
 0x10a   : > { %s760_s14 = smov %s662_s25  ;;  %s761_s15 = smov %s579_s16 }
 0x10b   : > { %s762_s16 = smov %s764_s20  ;;  %15 = sbr.rel (!%p13_p5) target bundleno = 4 (0x4), region = 67 }
 0x112   :  { %359 = vsyncpa [#allocation3], 1 }
 0x113   :  { %361 = vsyncpa [#allocation3 + $0x1], 1 }

</bundles_post_ra>
